<compile_context>
chip_gen: v7x
topology: tpu7x:2x2x1
jax: 0.10.0
libtpu: 0.0.40
codegen_flags: <defaults>
</compile_context>

<pallas_src>
import functools

import jax
import jax.numpy as jnp
from jax.experimental import pallas as pl
from jax.experimental.pallas import tpu as pltpu

_LANES = 128
_SUB = 8  # sublanes per f32 vreg


def _sq_sum_partial_kernel(pred_ref, true_ref, out_ref, acc_ref, *, rows_main):
    part = pl.program_id(0)           # "parallel" axis: per-part partial sum
    step = pl.program_id(1)           # "arbitrary" axis: reduction over row tiles
    steps = pl.num_programs(1)
    tb = pred_ref.shape[0]

    @pl.when(step == 0)
    def _init():
        acc_ref[...] = jnp.zeros_like(acc_ref)

    # Upcast inside the kernel (mirrors .float() in PyTorch; keeps HBM traffic narrow).
    pred = pred_ref[...].astype(jnp.float32)
    true = true_ref[...].astype(jnp.float32)
    diff = pred - true
    sq = diff * diff

    block = part * steps + step                   # logical (unclamped) block index
    needs_mask = (block + 1) * tb > rows_main     # ragged last tile OR clamped duplicate

    @pl.when(jnp.logical_not(needs_mask))
    def _fast():
        # Sublane-aligned reshape (groups of 8 rows) is free; leading-axis sum is
        # plain vreg adds into the single-vreg accumulator.
        acc_ref[...] += jnp.sum(sq.reshape(tb // _SUB, _SUB, _LANES), axis=0)

    @pl.when(needs_mask)
    def _edge():
        row = block * tb + jax.lax.broadcasted_iota(jnp.int32, (tb, 1), 0)
        sq_m = jnp.where(row < rows_main, sq, 0.0)   # discards garbage/NaN in OOB rows
        acc_ref[...] += jnp.sum(sq_m.reshape(tb // _SUB, _SUB, _LANES), axis=0)

    @pl.when(step == steps - 1)
    def _finalize():
        out_ref[0, 0] = jnp.sum(acc_ref[...])        # single tiny cross-lane reduce


def _default_num_parts():
    # 2 TensorCores per chip on v7x; single TC on v5e/v6e.
    try:
        kind = jax.devices()[0].device_kind.lower()
    except Exception:  # pragma: no cover
        return 1
    return 2 if "v7" in kind else 1


def regression_loss(predict_label, true_label, *, block_rows=4096, num_parts=None,
                    use_pallas=None):
    """Pallas implementation of the PyTorch regression_loss.forward."""
    assert predict_label.shape == true_label.shape
    assert predict_label.ndim == 2, "module semantics imply (batch, num_labels)"
    batch = predict_label.shape[0]
    n = predict_label.size

    # Main part: largest prefix that is a multiple of 8*128 elements (rows % 8 == 0).
    rows_main = (n // (_SUB * _LANES)) * _SUB
    n_main = rows_main * _LANES

    if use_pallas is None:
        use_pallas = rows_main >= _SUB
    if not use_pallas or rows_main == 0:
        # Tiny inputs: launch + per-step overhead dominates; let XLA fuse it.
        d = predict_label.astype(jnp.float32) - true_label.astype(jnp.float32)
        return jnp.sum(d * d) / jnp.float32(batch)

    p_flat = predict_label.reshape(-1)
    t_flat = true_label.reshape(-1)
    p2d = p_flat[:n_main].reshape(rows_main, _LANES)   # no pad; full-extent slice is free
    t2d = t_flat[:n_main].reshape(rows_main, _LANES)   # when n is 1024-aligned

    # ---- tiling ----
    tb = max(_SUB, min(int(block_rows), 8192))          # cap for v7x 64 MiB per-TC VMEM
    tb = ((tb + _SUB - 1) // _SUB) * _SUB                # multiple of 8 (lowering rule)
    tb = min(tb, rows_main)
    total_blocks = pl.cdiv(rows_main, tb)

    if num_parts is None:
        num_parts = _default_num_parts()
    parts = max(1, min(int(num_parts), total_blocks))    # leading "parallel" split
    steps = pl.cdiv(total_blocks, parts)

    # Clamp the DMA block index so we never issue a fully out-of-bounds copy;
    # duplicated tiles are zeroed by the gated in-kernel row mask.
    def in_map(p, s):
        return (jnp.minimum(p * steps + s, total_blocks - 1), 0)

    itemsize = predict_label.dtype.itemsize
    # 2 inputs x 2 pipeline buffers per input, plus headroom; never below the 32 MiB
    # default (raises v5e's 16 MiB default when large tiles are requested).
    vmem_limit = int(max(32 << 20, 4 * tb * _LANES * itemsize + (2 << 20)))

    kernel = functools.partial(_sq_sum_partial_kernel, rows_main=rows_main)

    partials = pl.pallas_call(
        kernel,
        out_shape=jax.ShapeDtypeStruct((parts, 1), jnp.float32),
        grid_spec=pltpu.PrefetchScalarGridSpec(
            num_scalar_prefetch=0,
            grid=(parts, steps),
            in_specs=[
                pl.BlockSpec((tb, _LANES), in_map),
                pl.BlockSpec((tb, _LANES), in_map),
            ],
            out_specs=pl.BlockSpec((1, 1), lambda p, s: (p, 0),
                                   memory_space=pltpu.SMEM),
            scratch_shapes=[pltpu.VMEM((_SUB, _LANES), jnp.float32)],
        ),
        compiler_params=pltpu.CompilerParams(
            dimension_semantics=("parallel", "arbitrary"),
            vmem_limit_bytes=vmem_limit),
        cost_estimate=pl.CostEstimate(
            flops=3 * n_main,
            transcendentals=0,
            bytes_accessed=2 * n_main * itemsize + parts * 4),
    )(p2d, t2d)

    total = jnp.sum(partials)

    # Ragged remainder (< 1024 elements): plain jnp, negligible cost, avoids jnp.pad copy.
    rem = n - n_main
    if rem:
        dp = p_flat[n_main:].astype(jnp.float32) - t_flat[n_main:].astype(jnp.float32)
        total = total + jnp.sum(dp * dp)

    return total / jnp.float32(batch)


if __name__ == "__main__":
    key = jax.random.PRNGKey(0)

    def ref_loss(p, t):
        p32 = p.astype(jnp.float32)
        t32 = t.astype(jnp.float32)
        return jnp.sum(jnp.mean((p32 - t32) ** 2, axis=0))

    # Case 1: main Pallas path, 1024-aligned total size (512*4 = 2048 elems, 16 rows).
    k1, k2 = jax.random.split(key)
    B, L = 512, 4
    pred = jax.random.normal(k1, (B, L), jnp.float32)
    true = jax.random.normal(k2, (B, L), jnp.float32)
    out = jax.block_until_ready(regression_loss(pred, true))
    assert jnp.allclose(out, ref_loss(pred, true), rtol=1e-5, atol=1e-4), \
        (out, ref_loss(pred, true))

    # Case 2: ragged total (1170 elems): 1024-elem prefix in the kernel, 146-elem
    # remainder summed in plain jnp.
    k3, k4 = jax.random.split(k1)
    B, L = 130, 9
    pred = jax.random.normal(k3, (B, L), jnp.float32)
    true = jax.random.normal(k4, (B, L), jnp.float32)
    out = jax.block_until_ready(regression_loss(pred, true, block_rows=8))
    assert jnp.allclose(out, ref_loss(pred, true), rtol=1e-5, atol=1e-4), \
        (out, ref_loss(pred, true))

    # Case 3: multi-step reduction + forced 2-way parallel split with a clamped
    # (fully-masked) duplicate tile AND a partial last tile (40 rows, tb=16 -> 3 blocks).
    k5, k6 = jax.random.split(k2)
    B, L = 1024, 5
    pred = jax.random.normal(k5, (B, L), jnp.float32)
    true = jax.random.normal(k6, (B, L), jnp.float32)
    out = jax.block_until_ready(regression_loss(pred, true, block_rows=16, num_parts=2))
    assert jnp.allclose(out, ref_loss(pred, true), rtol=1e-5, atol=1e-4), \
        (out, ref_loss(pred, true))

    # Case 4: bf16 inputs streamed in native dtype, upcast inside the kernel.
    k7, k8 = jax.random.split(k3)
    B, L = 256, 16
    pred = jax.random.normal(k7, (B, L), jnp.bfloat16)
    true = jax.random.normal(k8, (B, L), jnp.bfloat16)
    out = jax.block_until_ready(regression_loss(pred, true))
    assert jnp.allclose(out, ref_loss(pred, true), rtol=1e-4, atol=1e-3), \
        (out, ref_loss(pred, true))

    # Case 5: tiny input -> plain-jnp fallback path (launch overhead would dominate).
    k9, k10 = jax.random.split(k4)
    B, L = 8, 4
    pred = jax.random.normal(k9, (B, L), jnp.float32)
    true = jax.random.normal(k10, (B, L), jnp.float32)
    out = jax.block_until_ready(regression_loss(pred, true))
    assert jnp.allclose(out, ref_loss(pred, true), rtol=1e-5, atol=1e-5), \
        (out, ref_loss(pred, true))

    print("KERNEL_OK")
</pallas_src>

<mosaic_0001>
module attributes {stable_mosaic.version = 11 : i64} {
  func.func @_sq_sum_partial_kernel(%arg0: i32, %arg1: i32, %arg2: memref<16x128xf32, #tpu.memory_space<vmem>>, %arg3: memref<16x128xf32, #tpu.memory_space<vmem>>, %arg4: memref<1x1xf32, #tpu.memory_space<smem>>, %arg5: memref<8x128xf32, #tpu.memory_space<vmem>>) attributes {dimension_semantics = [#tpu.dimension_semantics<parallel>, #tpu.dimension_semantics<arbitrary>], iteration_bounds = array<i64: 1, 1>, scalar_prefetch = 0 : i64, scratch_operands = 1 : i64, tpu.core_type = #tpu.core_type<tc>, window_params = [{transform_indices = @transform_0, window_bounds = array<i64: 16, 128>}, {transform_indices = @transform_1, window_bounds = array<i64: 16, 128>}, {transform_indices = @transform_2, window_bounds = array<i64: 1, 1>}]} {
    %c0_i32 = arith.constant 0 : i32
    %0 = arith.cmpi eq, %arg1, %c0_i32 : i32
    %1 = arith.extui %0 : i1 to i32
    %c0_i32_0 = arith.constant 0 : i32
    %2 = arith.cmpi ne, %1, %c0_i32_0 : i32
    scf.if %2 {
      %cst = arith.constant 0.000000e+00 : f32
      %20 = vector.broadcast %cst : f32 to vector<8x128xf32>
      %c0_10 = arith.constant 0 : index
      %c0_11 = arith.constant 0 : index
      %21 = vector.load %arg5[%c0_10, %c0_11] : memref<8x128xf32, #tpu.memory_space<vmem>>, vector<8x128xf32>
      tpu.vector_store %arg5[%c0_10, %c0_11], %20 {strides = array<i32>} : memref<8x128xf32, #tpu.memory_space<vmem>>, vector<8x128xf32>,
    } else {
    }
    %c0 = arith.constant 0 : index
    %c0_1 = arith.constant 0 : index
    %3 = vector.load %arg2[%c0, %c0_1] : memref<16x128xf32, #tpu.memory_space<vmem>>, vector<16x128xf32>
    %c0_2 = arith.constant 0 : index
    %c0_3 = arith.constant 0 : index
    %4 = vector.load %arg3[%c0_2, %c0_3] : memref<16x128xf32, #tpu.memory_space<vmem>>, vector<16x128xf32>
    %5 = arith.subf %3, %4 : vector<16x128xf32>
    %6 = arith.mulf %5, %5 : vector<16x128xf32>
    %c1_i32 = arith.constant 1 : i32
    %7 = arith.muli %arg0, %c1_i32 : i32
    %8 = arith.addi %7, %arg1 : i32
    %c1_i32_4 = arith.constant 1 : i32
    %9 = arith.addi %8, %c1_i32_4 : i32
    %c16_i32 = arith.constant 16 : i32
    %10 = arith.muli %9, %c16_i32 : i32
    %c16_i32_5 = arith.constant 16 : i32
    %11 = arith.cmpi sgt, %10, %c16_i32_5 : i32
    %true = arith.constant true
    %12 = arith.xori %11, %true : i1
    %13 = arith.extui %12 : i1 to i32
    %c0_i32_6 = arith.constant 0 : i32
    %14 = arith.cmpi ne, %13, %c0_i32_6 : i32
    scf.if %14 {
      %c0_10 = arith.constant 0 : index
      %c0_11 = arith.constant 0 : index
      %20 = vector.load %arg5[%c0_10, %c0_11] : memref<8x128xf32, #tpu.memory_space<vmem>>, vector<8x128xf32>
      %21 = vector.shape_cast %6 : vector<16x128xf32> to vector<2x8x128xf32>
      %cst = arith.constant dense<0.000000e+00> : vector<8x128xf32>
      %22 = vector.multi_reduction <add>, %21, %cst [0] : vector<2x8x128xf32> to vector<8x128xf32>
      %23 = arith.addf %20, %22 : vector<8x128xf32>
      %c0_12 = arith.constant 0 : index
      %c0_13 = arith.constant 0 : index
      %24 = vector.load %arg5[%c0_12, %c0_13] : memref<8x128xf32, #tpu.memory_space<vmem>>, vector<8x128xf32>
      tpu.vector_store %arg5[%c0_12, %c0_13], %23 {strides = array<i32>} : memref<8x128xf32, #tpu.memory_space<vmem>>, vector<8x128xf32>,
    } else {
    }
    %15 = arith.extui %11 : i1 to i32
    %c0_i32_7 = arith.constant 0 : i32
    %16 = arith.cmpi ne, %15, %c0_i32_7 : i32
    scf.if %16 {
      %c16_i32_10 = arith.constant 16 : i32
      %20 = arith.muli %8, %c16_i32_10 : i32
      %21 = tpu.iota {dimensions = array<i32: 0>} : vector<16x1xi32>
      %22 = vector.broadcast %20 : i32 to vector<16x1xi32>
      %23 = arith.addi %22, %21 : vector<16x1xi32>
      %c16_i32_11 = arith.constant 16 : i32
      %24 = vector.broadcast %c16_i32_11 : i32 to vector<16x1xi32>
      %25 = arith.cmpi slt, %23, %24 : vector<16x1xi32>
      %cst = arith.constant 0.000000e+00 : f32
      %26 = vector.shape_cast %25 : vector<16x1xi1> to vector<16x1xi1>
      %27 = vector.broadcast %26 : vector<16x1xi1> to vector<16x128xi1>
      %28 = vector.broadcast %cst : f32 to vector<16x128xf32>
      %29 = arith.select %27, %6, %28 : vector<16x128xi1>, vector<16x128xf32>
      %c0_12 = arith.constant 0 : index
      %c0_13 = arith.constant 0 : index
      %30 = vector.load %arg5[%c0_12, %c0_13] : memref<8x128xf32, #tpu.memory_space<vmem>>, vector<8x128xf32>
      %31 = vector.shape_cast %29 : vector<16x128xf32> to vector<2x8x128xf32>
      %cst_14 = arith.constant dense<0.000000e+00> : vector<8x128xf32>
      %32 = vector.multi_reduction <add>, %31, %cst_14 [0] : vector<2x8x128xf32> to vector<8x128xf32>
      %33 = arith.addf %30, %32 : vector<8x128xf32>
      %c0_15 = arith.constant 0 : index
      %c0_16 = arith.constant 0 : index
      %34 = vector.load %arg5[%c0_15, %c0_16] : memref<8x128xf32, #tpu.memory_space<vmem>>, vector<8x128xf32>
      tpu.vector_store %arg5[%c0_15, %c0_16], %33 {strides = array<i32>} : memref<8x128xf32, #tpu.memory_space<vmem>>, vector<8x128xf32>,
    } else {
    }
    %c0_i32_8 = arith.constant 0 : i32
    %17 = arith.cmpi eq, %arg1, %c0_i32_8 : i32
    %18 = arith.extui %17 : i1 to i32
    %c0_i32_9 = arith.constant 0 : i32
    %19 = arith.cmpi ne, %18, %c0_i32_9 : i32
    scf.if %19 {
      %c0_10 = arith.constant 0 : index
      %c0_11 = arith.constant 0 : index
      %20 = vector.load %arg5[%c0_10, %c0_11] : memref<8x128xf32, #tpu.memory_space<vmem>>, vector<8x128xf32>
      %21 = vector.shape_cast %20 : vector<8x128xf32> to vector<1x8x128xf32>
      %cst = arith.constant dense<0.000000e+00> : vector<1xf32>
      %22 = vector.multi_reduction <add>, %21, %cst [1, 2] : vector<1x8x128xf32> to vector<1xf32>
      %23 = vector.shape_cast %22 : vector<1xf32> to vector<1x1x1xf32>
      %24 = vector.extract %23[0, 0, 0] : f32 from vector<1x1x1xf32>
      %c0_12 = arith.constant 0 : index
      %c0_13 = arith.constant 0 : index
      %25 = memref.load %arg4[%c0_12, %c0_13] : memref<1x1xf32, #tpu.memory_space<smem>>
      memref.store %24, %arg4[%c0_12, %c0_13] : memref<1x1xf32, #tpu.memory_space<smem>>
    } else {
    }
    return
  }
  func.func @transform_0(%arg0: i32, %arg1: i32) -> (i32, i32) {
    %c1_i32 = arith.constant 1 : i32
    %0 = arith.muli %arg0, %c1_i32 : i32
    %1 = arith.addi %0, %arg1 : i32
    %c0_i32 = arith.constant 0 : i32
    %2 = arith.minsi %1, %c0_i32 : i32
    %c0_i32_0 = arith.constant 0 : i32
    %c0_i32_1 = arith.constant 0 : i32
    return %2, %c0_i32_0 : i32, i32
  }
  func.func @transform_1(%arg0: i32, %arg1: i32) -> (i32, i32) {
    %c1_i32 = arith.constant 1 : i32
    %0 = arith.muli %arg0, %c1_i32 : i32
    %1 = arith.addi %0, %arg1 : i32
    %c0_i32 = arith.constant 0 : i32
    %2 = arith.minsi %1, %c0_i32 : i32
    %c0_i32_0 = arith.constant 0 : i32
    %c0_i32_1 = arith.constant 0 : i32
    return %2, %c0_i32_0 : i32, i32
  }
  func.func @transform_2(%arg0: i32, %arg1: i32) -> (i32, i32) {
    %c0_i32 = arith.constant 0 : i32
    %c0_i32_0 = arith.constant 0 : i32
    return %arg0, %c0_i32 : i32, i32
  }
}

</mosaic_0001>

<bundles_post_ra>
// kernel: tpu_custom_call.1
= control target key start
LH: loop header
LB: loop body
LE: loop exit
PB: predicated region body
PF: predicated region fallthrough
CT: control target
= control target key end

     0   :  { %7 = vsyncpa [#allocation4], 0  ;;  %s264_s0 = inlined_call_operand.hbm [shape: f32[16,128], index: 0, kind: input, shape index: {}]   ;;  %s265_s1 = inlined_call_operand.hbm [shape: f32[16,128], index: 1, kind: input, shape index: {}]   ;;  %s266_s2 = inlined_call_operand.hbm [shape: f32[1,1], index: 2, kind: output, shape index: {}]  }
   0x1   :  { %8 = vsyncpa [#allocation7], 0 }
   0x2   :  { %9 = vsyncpa [#allocation5], 0  ;;  %s208_s9 = smov [#allocation3]   ;;  %s148_s13 = scalar_lea.hbm %s264_s0, 256 }
   0x3   :  { %s21_s10 = sshll.u32 %s208_s9, 4  ;;  %p149_p0 = scmp.ne.s32.totalorder %s264_s0, %s148_s13  ;;  %s22_s10 = int_to_ptr.vmem [resolvable:$true] %s21_s10 }
   0x4   :  { %p152_p1 = scmp.lt.u32.totalorder %s148_s13, %s264_s0 }
   0x6   :  { %p154_p2 = pnand %p152_p1, %p149_p0 }
   0x8   :  { %157 = shalt.err (!%p154_p2)
}
   0x9   :  { %s158_s18 = scalar_lea.vmem %s22_s10, 256  ;;  %p163_p4 = scmp.lt.s32.totalorder %s22_s10, %s22_s10 }
   0xa   :  { %p159_p3 = scmp.ne.s32.totalorder %s22_s10, %s158_s18  ;;  %p164_p5 = scmp.lt.s32.totalorder %s158_s18, %s158_s18 }
   0xc   :  { %p165_p6 = por %p164_p5, %p163_p4 }
   0xe   :  { %p166_p7 = pnand %p165_p6, %p159_p3 }
  0x10   :  { %169 = shalt.err (!%p166_p7)
}
  0x11   :  { %s209_s19 = smov 128   ;;  %s210_s20 = smov 8  }
  0x12   :  { %27 = dma.hbm_to_vmem [thread:$0]  %s264_s0, 256, %s22_s10, [#allocation4], %s209_s19, %s209_s19, %s210_s20  }
  0x13   :  { %s211_s23 = smov [#allocation6]   ;;  %s170_s27 = scalar_lea.hbm %s265_s1, 256 }
  0x14   :  { %s39_s24 = sshll.u32 %s211_s23, 4  ;;  %p171_p8 = scmp.ne.s32.totalorder %s265_s1, %s170_s27  ;;  %s40_s24 = int_to_ptr.vmem [resolvable:$true] %s39_s24 }
  0x15   :  { %p174_p9 = scmp.lt.u32.totalorder %s170_s27, %s265_s1 }
  0x17   :  { %p176_p10 = pnand %p174_p9, %p171_p8 }
  0x19   :  { %179 = shalt.err (!%p176_p10)
}
  0x1a   :  { %s180_s4 = scalar_lea.vmem %s40_s24, 256  ;;  %p185_p12 = scmp.lt.s32.totalorder %s40_s24, %s40_s24 }
  0x1b   :  { %p181_p11 = scmp.ne.s32.totalorder %s40_s24, %s180_s4  ;;  %p186_p13 = scmp.lt.s32.totalorder %s180_s4, %s180_s4 }
  0x1d   :  { %p187_p0 = por %p186_p13, %p185_p12 }
  0x1f   :  { %p188_p1 = pnand %p187_p0, %p181_p11 }
  0x21   :  { %191 = shalt.err (!%p188_p1)
}
  0x22   :  { %45 = dma.hbm_to_vmem [thread:$0]  %s265_s1, 256, %s40_s24, [#allocation7], %s209_s19, %s209_s19, %s210_s20  }
  0x23   :  { %202 = dma.done.wait [#allocation4], 256  }
  0x24   :  { %203 = vsyncadd [#allocation4], 4294967040 }
  0x25   :  { %204 = dma.done.wait [#allocation7], 256  }
  0x26   :  { %205 = vsyncadd [#allocation7], 4294967040  ;;  %v65_v0 = vld [vmem:[#allocation3] sm:$0xff]  ;;  %v66_v1 = vld [vmem:[#allocation3 + $0x8] sm:$0xff]  ;;  %s192_s8 = scalar_lea.hbm %s266_s2, 16 }
  0x27   :  { %v67_v2 = vld [vmem:[#allocation6] sm:$0xff]  ;;  %v68_v3 = vld [vmem:[#allocation6 + $0x8] sm:$0xff]  ;;  %p193_p2 = scmp.ne.s32.totalorder %s266_s2, %s192_s8  ;;  %p196_p3 = scmp.lt.u32.totalorder %s192_s8, %s266_s2 }
  0x28   :  { %v69_v4 = vsub.f32 %v65_v0, %v67_v2  ;;  %v70_v5 = vsub.f32 %v66_v1, %v68_v3 }
  0x29   :  { %p198_p4 = pnand %p196_p3, %p193_p2 }
  0x2a   :  { %v71_v6 = vmul.f32 %v69_v4, %v69_v4  ;;  %v72_v7 = vmul.f32 %v70_v5, %v70_v5 }
  0x2c   :  { %v82_v8 = vadd.f32 %v72_v7, %v71_v6 }
  0x2e   :  { %111 = vadd.xlane.f32.xlu0 %v82_v8 }
  0xbb   :  { %v112_v9 = vpop.xlane.xlu0 %111 }
  0xbc   :  { %v113_v10 = vrot.slane %v112_v9, 4 }
  0xbe   :  { %v114_v11 = vadd.f32 %v113_v10, %v112_v9 }
  0xc0   :  { %v115_v12 = vrot.slane %v114_v11, 2 }
  0xc2   :  { %v116_v13 = vadd.f32 %v115_v12, %v114_v11 }
  0xc4   :  { %v117_v14 = vrot.slane %v116_v13, 1 }
  0xc6   :  { %v118_v15 = vadd.f32 %v117_v14, %v116_v13 }
  0xc8   :  { %141 = vpush %v118_v15 }
  0xf9   :  { %s142_s1 = spop %141 }
  0xfa   :  { %121 = sst [smem:[#allocation8]] %s142_s1 }
  0xfb   :  { %201 = shalt.err (!%p198_p4)
}
  0xfc   :  { %s212_s13 = smov [#allocation8]  }
  0xfd   :  { %129 = dma.smem_to_hbm %s212_s13, 16, %s266_s2, [#allocation5]  }
  0xfe   :  { %206 = dma.done.wait [#allocation5], 16  }
  0xff   :  { %207 = vsyncadd [#allocation5], 4294967280 }
 0x100   :  { %133 = sfence }
 0x101   :  { %134 = vsyncpa [#allocation4], 1 }
 0x102   :  { %135 = vsyncpa [#allocation7], 1 }
 0x103   :  { %136 = vsyncpa [#allocation5], 1 }

</bundles_post_ra>
